<compile_context>
chip_gen: v5e
topology: v5e:2x2
jax: 0.10.0
libtpu: 0.0.40
codegen_flags: <defaults>
</compile_context>

<pallas_src>
import jax
import jax.numpy as jnp
from jax.experimental import pallas as pl
from jax.experimental.pallas import tpu as pltpu


def _round_up(x, m):
    return (x + m - 1) // m * m


def _pick_tile(rows, tile_rows, per_row_bytes, vmem_budget=16 * 1024 * 1024):
    """Row tile that is (a) sublane aligned (multiple of 8, or == rows for tiny
    inputs), (b) keeps double-buffered VMEM under `vmem_budget`, and (c) leaves
    the grid with >= 2 steps whenever possible (v7x has 2 TensorCores)."""
    cap = max(8, (vmem_budget // (2 * per_row_bytes)) // 8 * 8)
    if rows <= 8:
        return rows
    t = min(tile_rows, cap, _round_up(pl.cdiv(rows, 2), 8))
    return min(t, rows)


# ---------------------------------------------------------------------------
# Kernels
# ---------------------------------------------------------------------------

def _rope_full_kernel(pos_ref, inv_ref, cos_ref, sin_ref):
    # pos_ref: (TR, 1) int32; inv_ref: (1, D) f32 (inv_freq duplicated);
    # outputs: (TR, D).  Single full-width (lane-dense) store per output.
    emb = pos_ref[...].astype(jnp.float32) * inv_ref[...]          # (TR, D)
    cos_ref[...] = jnp.cos(emb).astype(cos_ref.dtype)
    sin_ref[...] = jnp.sin(emb).astype(sin_ref.dtype)


def _rope_half_kernel(pos_ref, inv_ref, cos_ref, sin_ref):
    # Only used when half = D//2 is a multiple of 128 (D >= 256): both halves of
    # the store are 128-lane aligned, so computing cos/sin once on the half-width
    # freqs genuinely halves the EUP work with unmasked stores.
    half = inv_ref.shape[1]
    freqs = pos_ref[...].astype(jnp.float32) * inv_ref[...]        # (TR, D//2)
    c = jnp.cos(freqs).astype(cos_ref.dtype)
    s = jnp.sin(freqs).astype(sin_ref.dtype)
    cos_ref[:, :half] = c
    cos_ref[:, half:] = c
    sin_ref[:, :half] = s
    sin_ref[:, half:] = s


def _rope_packed_kernel(pos_ref, sel_ref, inv_ref, cos_ref, sin_ref):
    # pos_ref: (TRP, 2k) int32 -- hi/lo split of k packed positions per row
    #          (hi = multiple of 256, lo < 256: both exactly representable even
    #          in bf16, so the MXU expansion below is exact for any pass mode).
    # sel_ref: (2k, 128) f32 0/1 selection table (row j and row k+j are one on
    #          lanes [ (j%k)*D, (j%k+1)*D ) ).
    # inv_ref: (1, 128) f32, inv_freq pattern duplicated per packed slot.
    # outputs: (TRP, 128) -- lane-dense.
    pos = pos_ref[...].astype(jnp.float32)                          # (TRP, 2k)
    # MXU matmul does the lane expansion on the otherwise-idle vector-extended
    # slot, leaving VPU/EUP free for the cos/sin work.
    pos_lanes = jnp.dot(pos, sel_ref[...],
                        preferred_element_type=jnp.float32)         # (TRP, 128)
    emb = pos_lanes * inv_ref[...]
    cos_ref[...] = jnp.cos(emb).astype(cos_ref.dtype)
    sin_ref[...] = jnp.sin(emb).astype(sin_ref.dtype)


# ---------------------------------------------------------------------------
# Wrapper (mirrors Gemma2RotaryEmbedding.forward)
# ---------------------------------------------------------------------------

def gemma2_rotary_embedding(x, position_ids, dim, base=10000.0, tile_rows=4096):
    """Returns (cos, sin) with shape (B, S, dim) and dtype x.dtype."""
    assert dim % 2 == 0, "rotary dim must be even"
    B, S = position_ids.shape
    rows = B * S
    half = dim // 2
    out_dtype = x.dtype
    itemsize = jnp.dtype(out_dtype).itemsize

    # __init__: inv_freq = 1 / base^(arange(0, dim, 2)/dim)
    inv_freq = 1.0 / (base ** (jnp.arange(0, dim, 2, dtype=jnp.float32) / dim))  # (half,)
    pos_flat = position_ids.reshape(rows).astype(jnp.int32)

    cparams = pltpu.CompilerParams(dimension_semantics=("parallel",))

    k = 128 // dim if (dim < 128 and 128 % dim == 0) else 1

    if k > 1:
        # ---- lane-dense PACKED path (dim < 128) ----
        rows_pad = _round_up(rows, k)
        if rows_pad != rows:
            pos_flat = jnp.pad(pos_flat, (0, rows_pad - rows))       # pad, slice later
        rows_p = rows_pad // k
        width = k * dim                                              # == 128

        per_row_bytes = 128 * 4 + 2 * width * itemsize               # pos pad + 2 outputs
        tile = _pick_tile(rows_p, tile_rows, per_row_bytes)
        grid = (pl.cdiv(rows_p, tile),)

        # hi/lo split: exact in bf16/f32 for positions < 65536.
        pos_in = pos_flat.reshape(rows_p, k)
        pos_lo = pos_in & 0xFF
        pos_split = jnp.concatenate([pos_in - pos_lo, pos_lo], axis=1)  # (rows_p, 2k)

        inv_full = jnp.concatenate([inv_freq, inv_freq])              # (dim,)
        inv_row = jnp.tile(inv_full, (k,)).reshape(1, width)          # (1, 128)
        sel = jnp.repeat(jnp.eye(k, dtype=jnp.float32), dim, axis=1)  # (k, 128)
        sel2 = jnp.concatenate([sel, sel], axis=0)                     # (2k, 128)

        cost = pl.CostEstimate(
            flops=2 * rows_pad * dim * (2 * k + 1),
            transcendentals=2 * rows_pad * dim,
            bytes_accessed=rows_p * 2 * k * 4 + (2 * k + 1) * width * 4
            + 2 * rows_pad * dim * itemsize,
        )
        cos, sin = pl.pallas_call(
            _rope_packed_kernel,
            out_shape=(
                jax.ShapeDtypeStruct((rows_p, width), out_dtype),
                jax.ShapeDtypeStruct((rows_p, width), out_dtype),
            ),
            grid=grid,
            in_specs=[
                pl.BlockSpec((tile, 2 * k), lambda i: (i, 0)),
                pl.BlockSpec((2 * k, width), lambda i: (0, 0)),
                pl.BlockSpec((1, width), lambda i: (0, 0)),
            ],
            out_specs=[
                pl.BlockSpec((tile, width), lambda i: (i, 0)),
                pl.BlockSpec((tile, width), lambda i: (i, 0)),
            ],
            compiler_params=cparams,
            cost_estimate=cost,
        )(pos_split, sel2, inv_row)
        # Row-major layout is identical -> reshape is free; slice drops padding.
        cos = cos.reshape(rows_pad, dim)[:rows]
        sin = sin.reshape(rows_pad, dim)[:rows]

    elif half % 128 == 0:
        # ---- HALF-freq double-store path (dim >= 256, lane-aligned halves) ----
        per_row_bytes = 128 * 4 + 2 * dim * itemsize
        tile = _pick_tile(rows, tile_rows, per_row_bytes)
        grid = (pl.cdiv(rows, tile),)
        inv2d = inv_freq.reshape(1, half)
        pos_in = pos_flat.reshape(rows, 1)

        cost = pl.CostEstimate(
            flops=rows * half,
            transcendentals=rows * dim,            # cos+sin over dim/2 each
            bytes_accessed=rows * 4 + half * 4 + 2 * rows * dim * itemsize,
        )
        cos, sin = pl.pallas_call(
            _rope_half_kernel,
            out_shape=(
                jax.ShapeDtypeStruct((rows, dim), out_dtype),
                jax.ShapeDtypeStruct((rows, dim), out_dtype),
            ),
            grid=grid,
            in_specs=[
                pl.BlockSpec((tile, 1), lambda i: (i, 0)),
                pl.BlockSpec((1, half), lambda i: (0, 0)),
            ],
            out_specs=[
                pl.BlockSpec((tile, dim), lambda i: (i, 0)),
                pl.BlockSpec((tile, dim), lambda i: (i, 0)),
            ],
            compiler_params=cparams,
            cost_estimate=cost,
        )(pos_in, inv2d)

    else:
        # ---- FULL-width path (dim == 128 Gemma2 head_dim; other odd sizes) ----
        per_row_bytes = 128 * 4 + 2 * dim * itemsize
        tile = _pick_tile(rows, tile_rows, per_row_bytes)
        grid = (pl.cdiv(rows, tile),)
        inv_full = jnp.concatenate([inv_freq, inv_freq]).reshape(1, dim)
        pos_in = pos_flat.reshape(rows, 1)

        cost = pl.CostEstimate(
            flops=rows * dim,
            transcendentals=2 * rows * dim,
            bytes_accessed=rows * 4 + dim * 4 + 2 * rows * dim * itemsize,
        )
        cos, sin = pl.pallas_call(
            _rope_full_kernel,
            out_shape=(
                jax.ShapeDtypeStruct((rows, dim), out_dtype),
                jax.ShapeDtypeStruct((rows, dim), out_dtype),
            ),
            grid=grid,
            in_specs=[
                pl.BlockSpec((tile, 1), lambda i: (i, 0)),
                pl.BlockSpec((1, dim), lambda i: (0, 0)),
            ],
            out_specs=[
                pl.BlockSpec((tile, dim), lambda i: (i, 0)),
                pl.BlockSpec((tile, dim), lambda i: (i, 0)),
            ],
            compiler_params=cparams,
            cost_estimate=cost,
        )(pos_in, inv_full)

    return cos.reshape(B, S, dim), sin.reshape(B, S, dim)


def _reference(x, position_ids, dim, base=10000.0):
    inv_freq = 1.0 / (base ** (jnp.arange(0, dim, 2, dtype=jnp.float32) / dim))
    freqs = position_ids.astype(jnp.float32)[:, :, None] * inv_freq[None, None, :]
    emb = jnp.concatenate([freqs, freqs], axis=-1)
    return jnp.cos(emb).astype(x.dtype), jnp.sin(emb).astype(x.dtype)


if __name__ == "__main__":
    key = jax.random.PRNGKey(0)
    k1, k2, k3, k4 = jax.random.split(key, 4)

    B, S, H = 2, 8, 4
    position_ids = jax.random.randint(k2, (B, S), 0, 2048, dtype=jnp.int32)

    def check(x, pos, dim):
        cos, sin = gemma2_rotary_embedding(x, pos, dim=dim, base=10000.0)
        cos = jax.block_until_ready(cos)
        sin = jax.block_until_ready(sin)
        cos_ref, sin_ref = _reference(x, pos, dim=dim)
        bb, ss = pos.shape
        assert cos.shape == (bb, ss, dim) and sin.shape == (bb, ss, dim)
        assert cos.dtype == x.dtype and sin.dtype == x.dtype
        assert jnp.allclose(cos.astype(jnp.float32), cos_ref.astype(jnp.float32), atol=2e-2)
        assert jnp.allclose(sin.astype(jnp.float32), sin_ref.astype(jnp.float32), atol=2e-2)

    # Case 1: dim=128 (real Gemma2 head_dim) -> full-width path.
    x = jax.random.normal(k1, (B, H, S, 128), jnp.float32).astype(jnp.bfloat16)
    check(x, position_ids, 128)

    # Case 2: dim=32 -> lane-dense packed path (MXU expansion).
    x2 = jax.random.normal(k3, (B, H, S, 32), jnp.float32).astype(jnp.bfloat16)
    check(x2, position_ids, 32)

    # Case 3: dim=256 -> half-freq double-store path (128-lane aligned halves).
    x3 = jax.random.normal(k4, (B, H, S, 256), jnp.float32).astype(jnp.bfloat16)
    check(x3, position_ids, 256)

    # Case 4: dim=64 with a ragged row count -> packed path with row padding.
    pos_ragged = jax.random.randint(k2, (1, 7), 0, 2048, dtype=jnp.int32)
    x4 = jax.random.normal(k1, (1, H, 7, 64), jnp.float32).astype(jnp.bfloat16)
    check(x4, pos_ragged, 64)

    print("KERNEL_OK")
</pallas_src>

<mosaic_0001>
module attributes {stable_mosaic.version = 11 : i64} {
  func.func @_rope_full_kernel(%arg0: i32, %arg1: memref<8x1xi32, #tpu.memory_space<vmem>>, %arg2: memref<1x128xf32, #tpu.memory_space<vmem>>, %arg3: memref<8x128xbf16, #tpu.memory_space<vmem>>, %arg4: memref<8x128xbf16, #tpu.memory_space<vmem>>) attributes {dimension_semantics = [#tpu.dimension_semantics<parallel>], iteration_bounds = array<i64: 2>, scalar_prefetch = 0 : i64, scratch_operands = 0 : i64, tpu.core_type = #tpu.core_type<tc>, window_params = [{transform_indices = @transform_0, window_bounds = array<i64: 8, 1>}, {pipeline_mode = #tpu.pipeline_mode<synchronous>, transform_indices = @transform_1, window_bounds = array<i64: 1, 128>}, {transform_indices = @transform_2, window_bounds = array<i64: 8, 128>}, {transform_indices = @transform_3, window_bounds = array<i64: 8, 128>}]} {
    %c0 = arith.constant 0 : index
    %c0_0 = arith.constant 0 : index
    %0 = vector.load %arg1[%c0, %c0_0] : memref<8x1xi32, #tpu.memory_space<vmem>>, vector<8x1xi32>
    %1 = arith.sitofp %0 : vector<8x1xi32> to vector<8x1xf32>
    %c0_1 = arith.constant 0 : index
    %c0_2 = arith.constant 0 : index
    %2 = vector.load %arg2[%c0_1, %c0_2] : memref<1x128xf32, #tpu.memory_space<vmem>>, vector<1x128xf32>
    %3 = vector.broadcast %1 : vector<8x1xf32> to vector<8x128xf32>
    %4 = vector.broadcast %2 : vector<1x128xf32> to vector<8x128xf32>
    %5 = arith.mulf %3, %4 : vector<8x128xf32>
    %6 = math.cos %5 : vector<8x128xf32>
    %7 = arith.truncf %6 : vector<8x128xf32> to vector<8x128xbf16>
    %c0_3 = arith.constant 0 : index
    %c0_4 = arith.constant 0 : index
    %8 = vector.load %arg3[%c0_3, %c0_4] : memref<8x128xbf16, #tpu.memory_space<vmem>>, vector<8x128xbf16>
    tpu.vector_store %arg3[%c0_3, %c0_4], %7 {strides = array<i32>} : memref<8x128xbf16, #tpu.memory_space<vmem>>, vector<8x128xbf16>,
    %9 = math.sin %5 : vector<8x128xf32>
    %10 = arith.truncf %9 : vector<8x128xf32> to vector<8x128xbf16>
    %c0_5 = arith.constant 0 : index
    %c0_6 = arith.constant 0 : index
    %11 = vector.load %arg4[%c0_5, %c0_6] : memref<8x128xbf16, #tpu.memory_space<vmem>>, vector<8x128xbf16>
    tpu.vector_store %arg4[%c0_5, %c0_6], %10 {strides = array<i32>} : memref<8x128xbf16, #tpu.memory_space<vmem>>, vector<8x128xbf16>,
    return
  }
  func.func @transform_0(%arg0: i32) -> (i32, i32) {
    %c0_i32 = arith.constant 0 : i32
    %c0_i32_0 = arith.constant 0 : i32
    return %arg0, %c0_i32 : i32, i32
  }
  func.func @transform_1(%arg0: i32) -> (i32, i32) {
    %c0_i32 = arith.constant 0 : i32
    %c0_i32_0 = arith.constant 0 : i32
    %c0_i32_1 = arith.constant 0 : i32
    return %c0_i32, %c0_i32_0 : i32, i32
  }
  func.func @transform_2(%arg0: i32) -> (i32, i32) {
    %c0_i32 = arith.constant 0 : i32
    %c0_i32_0 = arith.constant 0 : i32
    return %arg0, %c0_i32 : i32, i32
  }
  func.func @transform_3(%arg0: i32) -> (i32, i32) {
    %c0_i32 = arith.constant 0 : i32
    %c0_i32_0 = arith.constant 0 : i32
    return %arg0, %c0_i32 : i32, i32
  }
}

</mosaic_0001>

<bundles_post_ra>
// kernel: tpu_custom_call.1
= control target key start
LH: loop header
LB: loop body
LE: loop exit
PB: predicated region body
PF: predicated region fallthrough
CT: control target
= control target key end

     0   :  { %9 = vsyncpa [#allocation3], 0  ;;  %s999_s0 = inlined_call_operand.vmem [shape: s32[16,1], index: 0, kind: input, shape index: {}]   ;;  %s1000_s1 = inlined_call_operand.vmem [shape: f32[1,128], index: 1, kind: input, shape index: {}]   ;;  %s1001_s2 = inlined_call_operand.hbm [shape: bf16[16,128], index: 2, kind: output, shape index: {0}]   ;;  %s1002_s3 = inlined_call_operand.hbm [shape: bf16[16,128], index: 3, kind: output, shape index: {1}]  }
   0x1   :  { %11 = vsyncpa [#allocation3 + $0x1], 0 }
   0x2   :  { %12 = vsyncpa [#allocation5], 0 }
   0x3   :  { %14 = vsyncpa [#allocation5 + $0x1], 0  ;;  %s824_s12 = smov 0   ;;  %s826_s13 = smov 0  }
   0x4   :  { %s828_s14 = smov 0   ;;  %s830_s15 = smov 0  }
   0x5 LB: > { %s845_s16 = sadd.s32 4294967295, %s795_s15   ;;  %s629_s17 = sadd.s32 4294967294, %s795_s15   ;;  %s795_s15 = sphi %s830_s15, %s1008_s15   ;;  %s791_s14 = sphi %s828_s14, %s1007_s14   ;;  %s787_s13 = sphi %s826_s13, %s1006_s13   ;;  %s783_s12 = sphi %s824_s12, %s1005_s12  }
   0x6   : > { %s849_s18 = sadd.s32 1, %s795_s15   ;;  %s74_s19 = sadd.s32 1, %s791_s14 }
   0x7   : > { %s71_s20 = ssub.s32 %s795_s15, %s849_s18  ;;  %p84_p0 = scmp.ne.s32.totalorder %s791_s14, %s787_s13 }
   0x8   : > { %p72_p1 = scmp.eq.s32.totalorder %s71_s20, 0  ;;  %p85_p2 = scmp.eq.s32.totalorder %s845_s16, 1 }
   0x9   : > { %p90_p3 = scmp.ne.s32.totalorder %s787_s13, %s783_s12  ;;  %p91_p4 = scmp.eq.s32.totalorder %s629_s17, 1 }
   0xa   : > { %s860_s21 = scalar_select %p72_p1, %s791_s14, %s74_s19  }
   0xb   : > { %p862_p5 = por %p85_p2, %p84_p0  ;;  %p866_p6 = por %p91_p4, %p90_p3 }
   0xc   : > { %p632_p7 = scmp.ge.s32.totalorder %s795_s15, 1  ;;  %p145_p8 = scmp.lt.s32.totalorder %s795_s15, 3 }
   0xe   : > { %p146_p9 = pnand %p632_p7, %p145_p8 }
   0xf   : > { %p173_p10 = scmp.lt.s32.totalorder (!%p146_p9), %s845_s16, 1  ;;  %s941_s4 = sand.u32 (!%p146_p9), 1, %s787_s13  }
  0x10   : > { %149 = sbr.rel (%p146_p9) target bundleno = 258 (0x102), region = 28  ;;  %s633_s5 = sshll.u32 (!%p146_p9), %s941_s4, 2 }
  0x11   : > { %s644_s6 = sshll.u32 (!%p146_p9), %s845_s16, 2  ;;  %s165_s19 = scalar_lea.vmem (!%p146_p9), [#allocation2], %s633_s5 }
  0x12   : > { %s518_s9 = scalar_lea.hbm (!%p146_p9), %s1001_s2, %s644_s6  ;;  %s532_s17 = scalar_lea.hbm (!%p146_p9), %s1002_s3, %s644_s6 }
  0x13   : > { %s520_s20 = sshll.u32 (!%p146_p9), %s165_s19, 4  ;;  %s536_s26 = sshll.u32 (!%p146_p9), %s532_s17, 4  ;;  %s521_s20 = int_to_ptr.vmem [resolvable:$true] %s520_s20  ;;  %s955_s26 = int_to_ptr.hbm [resolvable:$true] %s536_s26 }
  0x14   : > { %s503_s27 = scalar_lea.sflag (!%p146_p9), [#allocation3], %s941_s4  ;;  %s721_s6 = scalar_lea.hbm (!%p146_p9), %s1001_s2, 8 }
  0x15   : > { %v797_v0 = vmov 0   ;;  %s174_s24 = scalar_select %p173_p10, %s845_s16, 1  ;;  %v700_v3 = vld [vmem:[%s1000_s1] ss:$0 sm:$0xff]  ;;  %v798_v17 = vmov 683565275  }
  0x16   : > { %699 = vset.pattern.permute.xlu0 %v797_v0  ;;  %v799_v19 = vmov 2475754826   ;;  %v800_v22 = vmov 2131351028   ;;  %v801_v25 = vmov 2102212464  }
  0x17   : > { %s635_s25 = sshll.u32 %s174_s24, 3  ;;  %v802_v28 = vmov 920167782   ;;  %v803_v31 = vmov 1326507024   ;;  %s522_s16 = sshll.u32 %s518_s9, 4  ;;  %s523_s16 = int_to_ptr.hbm [resolvable:$true] %s522_s16 }
  0x18   : > { %s176_s28 = scalar_lea.vmem %s999_s0, %s635_s25  ;;  %s172_s24 = scalar_lea.vmem [#allocation4], %s633_s5 }
  0x19   : > { %v177_v1 = vld [vmem:[%s176_s28] sm:$0xff]  ;;  %s534_s25 = sshll.u32 %s172_s24, 4  ;;  %s715_s28 = sshra.s32 %s523_s16, 4  ;;  %s953_s25 = int_to_ptr.vmem [resolvable:$true] %s534_s25  ;;  %s716_s28 = int_to_ptr.hbm [resolvable:$true] %s715_s28 }
  0x1a   : > { %v178_v2 = vcvt.s32.f32 %v177_v1  ;;  %s717_s29 = scalar_lea.hbm %s716_s28, 4  ;;  %p722_p0 = scmp.lt.s32.totalorder %s716_s28, %s1001_s2 }
  0x1b   : > { %p718_p11 = scmp.ne.s32.totalorder %s716_s28, %s717_s29  ;;  %p723_p1 = scmp.lt.s32.totalorder %s721_s6, %s717_s29 }
  0x1c   : > { %182 = vperm.xlu0 %699, %v178_v2  }
  0x1d   : > { %p719_p12 = pnand %p718_p11, %p862_p5  ;;  %p724_p2 = por %p723_p1, %p722_p0 }
  0x1f   : > { %p720_p13 = pneg %p719_p12 }
  0x21   : > { %p725_p3 = pnand %p724_p2, %p720_p13 }
  0x8e   : > { %v183_v4 = vpop.permute.xlu0 %182 }
  0x8f   : > { %v881_v5 = vmul.f32 %v700_v3, %v183_v4 }
  0x91   : > { %v192_v6 = vand.u32 2139095040, %v881_v5  ;;  %v189_v9 = vand.u32 2147483647, %v881_v5  ;;  %vm191_vm12 = vcmp.lt.s32.totalorder %v881_v5, 0 }
  0x93   : > { %v193_v7 = vshrl.u32 %v192_v6, 23  ;;  %v196_v11 = vand.u32 8388607, %v189_v9  ;;  %vm190_vm13 = vcmp.le.f32.partialorder %v189_v9, 0.7853982 }
  0x95   : > { %v636_v8 = vadd.s32 4294967169, %v193_v7  ;;  %v197_v15 = vor.u32 8388608, %v196_v11 }
  0x97   : > { %v199_v10 = vadd.s32 1, %v636_v8  ;;  %v898_v38 = vshll.u32 %v197_v15, 8 }
  0x99   : > { %vm200_vm0 = vcmp.gt.s32.totalorder %v199_v10, 0  ;;  %v238_v47 = vand.u32 65535, %v898_v38  ;;  %v239_v48 = vshrl.u32 %v898_v38, 16 }
  0x9a   : > { %v201_v12 = vsel %vm200_vm0, %v199_v10, 0 }
  0x9b   : > { %v203_v13 = vand.u32 31, %v201_v12  ;;  %v889_v16 = vshrl.u32 %v201_v12, 5 }
  0x9d   : > { %v887_v14 = vsub.s32 32, %v203_v13  ;;  %v206_v18 = vshll.u32 %v798_v17, %v203_v13  ;;  %v209_v20 = vshll.u32 %v799_v19, %v203_v13  ;;  %v212_v24 = vshll.u32 %v800_v22, %v203_v13 }
  0x9e   : > { %v215_v27 = vshll.u32 %v801_v25, %v203_v13  ;;  %v218_v30 = vshll.u32 %v802_v28, %v203_v13  ;;  %vm221_vm1 = vcmp.lt.s32.totalorder %v889_v16, 1  ;;  %vm224_vm2 = vcmp.lt.s32.totalorder %v889_v16, 4 }
  0x9f   : > { %v207_v21 = vshrl.u32 %v799_v19, %v887_v14  ;;  %v210_v23 = vshrl.u32 %v800_v22, %v887_v14  ;;  %v213_v26 = vshrl.u32 %v801_v25, %v887_v14  ;;  %v216_v29 = vshrl.u32 %v802_v28, %v887_v14 }
  0xa0   : > { %v219_v32 = vshrl.u32 %v803_v31, %v887_v14  ;;  %vm223_vm3 = vcmp.lt.s32.totalorder %v889_v16, 3  ;;  %vm222_vm4 = vcmp.lt.s32.totalorder %v889_v16, 2  ;;  %v205_v12 = vshrl.u32 %v798_v17, %v887_v14 }
  0xa1   : > { %v208_v33 = vor.u32 %v207_v21, %v206_v18  ;;  %v211_v34 = vor.u32 %v210_v23, %v209_v20  ;;  %v214_v35 = vor.u32 %v213_v26, %v212_v24  ;;  %v217_v36 = vor.u32 %v216_v29, %v215_v27 }
  0xa2   : > { %v220_v37 = vor.u32 %v219_v32, %v218_v30 }
  0xa3   : > { %v229_v39 = vsel %vm221_vm1, %v208_v33, %v211_v34  ;;  %v233_v40 = vsel %vm221_vm1, %v211_v34, %v214_v35  ;;  %v230_v41 = vsel %vm224_vm2, %v217_v36, 920167782  ;;  %v226_v8 = vsel %vm224_vm2, %v214_v35, 2102212464 }
  0xa4   : > { %v234_v42 = vsel %vm224_vm2, %v220_v37, 1326507024  ;;  %v231_v43 = vsel %vm223_vm3, %v214_v35, %v230_v41  ;;  %v225_v21 = vsel %vm221_vm1, %v205_v12, %v208_v33  ;;  %v227_v22 = vsel %vm223_vm3, %v211_v34, %v226_v8 }
  0xa5   : > { %v235_v44 = vsel %vm223_vm3, %v217_v36, %v234_v42  ;;  %v232_v45 = vsel %vm222_vm4, %v229_v39, %v231_v43  ;;  %v228_v14 = vsel %vm222_vm4, %v225_v21, %v227_v22 }
  0xa6   : > { %v236_v46 = vsel %vm222_vm4, %v233_v40, %v235_v44  ;;  %v262_v51 = vand.u32 65535, %v232_v45  ;;  %v263_v52 = vshrl.u32 %v232_v45, 16  ;;  %v282_v29 = vmul.u32 %v898_v38, %v228_v14 }
  0xa7   : > { %v240_v49 = vand.u32 65535, %v236_v46  ;;  %v241_v50 = vshrl.u32 %v236_v46, 16  ;;  %vm332_vm4 = vweird.f32 %v881_v5 }
  0xa8   : > { %v265_v55 = vmul.u32 %v263_v52, %v238_v47  ;;  %v266_v56 = vmul.u32 %v262_v51, %v239_v48  ;;  %v264_v60 = vmul.u32 %v262_v51, %v238_v47  ;;  %v267_v1 = vmul.u32 %v263_v52, %v239_v48 }
  0xa9   : > { %v243_v53 = vmul.u32 %v241_v50, %v238_v47  ;;  %v244_v54 = vmul.u32 %v240_v49, %v239_v48  ;;  %v242_v57 = vmul.u32 %v240_v49, %v238_v47  ;;  %v245_v59 = vmul.u32 %v241_v50, %v239_v48 }
  0xaa   : > { %v268_v61 = vshll.u32 %v265_v55, 16  ;;  %v270_v3 = vshll.u32 %v266_v56, 16  ;;  %v269_v19 = vshrl.u32 %v265_v55, 16  ;;  %v271_v25 = vshrl.u32 %v266_v56, 16 }
  0xab   : > { %v246_v58 = vshll.u32 %v243_v53, 16  ;;  %v248_v62 = vshll.u32 %v244_v54, 16  ;;  %v247_v13 = vshrl.u32 %v243_v53, 16  ;;  %v249_v23 = vshrl.u32 %v244_v54, 16 }
  0xac   : > { %vm272_vm6 = vc.u32 %v264_v60, %v268_v61  ;;  %v274_v4 = vadd.s32 %v268_v61, %v264_v60 }
  0xad   : > { %vm250_vm5 = vc.u32 %v242_v57, %v246_v58  ;;  %v252_v63 = vadd.s32 %v246_v58, %v242_v57  ;;  %v273_v7 = vsel %vm272_vm6, 1, %v797_v0 }
  0xae   : > { %v251_v2 = vsel %vm250_vm5, 1, %v797_v0  ;;  %v275_v11 = vadd.s32 %v273_v7, %v267_v1  ;;  %vm276_vm8 = vc.u32 %v274_v4, %v270_v3  ;;  %v278_v28 = vadd.s32 %v274_v4, %v270_v3 }
  0xaf   : > { %v253_v6 = vadd.s32 %v251_v2, %v245_v59  ;;  %vm254_vm7 = vc.u32 %v252_v63, %v248_v62  ;;  %v277_v18 = vsel %vm276_vm8, 1, %v797_v0 }
  0xb0   : > { %v255_v10 = vsel %vm254_vm7, 1, %v797_v0  ;;  %v279_v20 = vadd.s32 %v277_v18, %v275_v11 }
  0xb1   : > { %v257_v15 = vadd.s32 %v255_v10, %v253_v6 }
  0xb2   : > { %v280_v26 = vadd.s32 %v279_v20, %v269_v19 }
  0xb3   : > { %v258_v24 = vadd.s32 %v257_v15, %v247_v13 }
  0xb4   : > { %v281_v17 = vadd.s32 %v280_v26, %v271_v25 }
  0xb5   : > { %v259_v27 = vadd.s32 %v258_v24, %v249_v23 }
  0xb6   : > { %v285_v0 = vadd.s32 1, %v281_v17 }
  0xb7   : > { %vm284_vm9 = vc.u32 %v259_v27, %v278_v28  ;;  %v283_v16 = vadd.s32 %v278_v28, %v259_v27 }
  0xb8   : > { %v286_v30 = vsel %vm284_vm9, %v285_v0, %v281_v17 }
  0xb9   : > { %v287_v31 = vadd.s32 %v286_v30, %v282_v29 }
  0xbb   : > { %v288_v32 = vadd.s32 536870912, %v287_v31 }
  0xbd   : > { %v289_v33 = vshrl.u32 %v288_v32, 30 }
  0xbf   : > { %v290_v35 = vshll.u32 %v289_v33, 30  ;;  %v313_v54 = vsub.s32 4, %v289_v33 }
  0xc1   : > { %v291_v34 = vsub.s32 %v287_v31, %v290_v35  ;;  %v314_v59 = vsel %vm191_vm12, %v313_v54, %v289_v33 }
  0xc2   : > { %v316_v62 = vsel %vm190_vm13, 0, %v314_v59 }
  0xc3   : > { %vm292_vm10 = vcmp.lt.s32.totalorder %v291_v34, 0  ;;  %v293_v36 = vsub.s32 0, %v291_v34  ;;  %v489_v9 = vadd.s32 3, %v316_v62  ;;  %v333_v10 = vand.u32 3, %v316_v62 }
  0xc5   : > { %v294_v37 = vsel %vm292_vm10, %v293_v36, %v291_v34  ;;  %v490_v11 = vand.u32 3, %v489_v9  ;;  %vm334_vm14 = vcmp.lt.s32.totalorder %v333_v10, 2  ;;  %vm335_vm15 = vcmp.eq.s32.totalorder %v333_v10, 0 }
  0xc6   : > { %v295_v39 = vclz %v294_v37  ;;  %vm338_vm0 = vcmp.eq.s32.totalorder %v333_v10, 2 }
  0xc7   : > { %vm491_vm1 = vcmp.lt.s32.totalorder %v490_v11, 2  ;;  %vm492_vm2 = vcmp.eq.s32.totalorder %v490_v11, 0  ;;  %vm495_vm3 = vcmp.eq.s32.totalorder %v490_v11, 2 }
  0xc8   : > { %v637_v40 = vadd.s32 4294967294, %v295_v39 }
  0xca   : > { %vm638_vm11 = vcmp.lt.s32.totalorder %v637_v40, 0 }
  0xcb   : > { %v298_v41 = vsel %vm638_vm11, 0, %v637_v40 }
  0xcc   : > { %v299_v42 = vsub.s32 32, %v298_v41  ;;  %v303_v43 = vsub.s32 4294967266, %v298_v41  ;;  %v300_v44 = vshll.u32 %v291_v34, %v298_v41 }
  0xce   : > { %v301_v45 = vshrl.u32 %v283_v16, %v299_v42  ;;  %v304_v46 = vadd.s32 127, %v303_v43 }
  0xd0   : > { %v302_v38 = vor.u32 %v301_v45, %v300_v44  ;;  %v305_v47 = vshll.u32 %v304_v46, 23 }
  0xd2   : > { %v306_v48 = vor.u32 4788187, %v305_v47  ;;  %v309_v50 = vcvt.s32.f32 %v302_v38 }
  0xd4   : > { %v307_v49 = vand.u32 2147483647, %v306_v48 }
  0xd6   : > { %v310_v51 = vmul.f32 %v309_v50, %v307_v49 }
  0xd8   : > { %v311_v52 = vxor.u32 2147483648, %v310_v51 }
  0xda   : > { %v312_v53 = vsel %vm191_vm12, %v311_v52, %v310_v51 }
  0xdb   : > { %v315_v55 = vsel %vm190_vm13, %v881_v5, %v312_v53 }
  0xdc   : > { %v317_v56 = vmul.f32 %v315_v55, %v315_v55 }
  0xde   : > { %v318_v57 = vmul.f32 -0.001358992, %v317_v56  ;;  %v325_v58 = vmul.f32 -0.00019511016, %v317_v56 }
  0xe0   : > { %v319_v60 = vadd.f32 0.041655596, %v318_v57  ;;  %v326_v61 = vadd.f32 0.008332121, %v325_v58 }
  0xe2   : > { %v320_v63 = vmul.f32 %v319_v60, %v317_v56  ;;  %v327_v1 = vmul.f32 %v326_v61, %v317_v56 }
  0xe4   : > { %v321_v2 = vadd.f32 -0.4999988, %v320_v63  ;;  %v328_v3 = vadd.f32 -0.16666654, %v327_v1 }
  0xe6   : > { %v322_v4 = vmul.f32 %v321_v2, %v317_v56  ;;  %v329_v6 = vmul.f32 %v328_v3, %v317_v56 }
  0xe8   : > { %v323_v7 = vadd.f32 1.0, %v322_v4  ;;  %v330_v8 = vadd.f32 1.0, %v329_v6 }
  0xea   : > { %v331_v12 = vmul.f32 %v330_v8, %v315_v55  ;;  %v339_v13 = vxor.u32 2147483648, %v323_v7 }
  0xec   : > { %v336_v15 = vxor.u32 2147483648, %v331_v12  ;;  %v340_v19 = vsel %vm338_vm0, %v339_v13, %v331_v12  ;;  %v497_v21 = vsel %vm495_vm3, %v339_v13, %v331_v12 }
  0xee   : > { %v337_v18 = vsel %vm335_vm15, %v323_v7, %v336_v15  ;;  %v494_v20 = vsel %vm492_vm2, %v323_v7, %v336_v15 }
  0xef   : > { %v341_v22 = vsel %vm334_vm14, %v337_v18, %v340_v19  ;;  %v498_v23 = vsel %vm491_vm1, %v494_v20, %v497_v21 }
  0xf0   : > { %v342_v24 = vsel %vm332_vm4, nan, %v341_v22  ;;  %v499_v25 = vsel %vm332_vm4, nan, %v498_v23 }
  0xf1   : > { %v343_v26 = vpack.c.bf16 %v342_v24, %v342_v24  ;;  %v500_v27 = vpack.c.bf16 %v499_v25, %v499_v25 }
  0xf3   : > { %344 = vst [vmem:[%s165_s19] sm:$0xf] %v343_v26 }
  0xf4   : > { %728 = shalt.err (!%p725_p3)
}
  0xf5   : > { %648 = dma.vmem_to_hbm [thread:$0]  (%p862_p5), %s521_s20, 64, %s523_s16, %s503_s27   ;;  %501 = vst [vmem:[%s172_s24] sm:$0xf] %v500_v27 }
  0xf6   : > { %s508_s9 = scalar_lea.sflag [#allocation5], %s941_s4  ;;  %s743_s10 = sshra.s32 %s955_s26, 4  ;;  %s744_s10 = int_to_ptr.hbm [resolvable:$true] %s743_s10 }
  0xf7   : > { %s745_s11 = scalar_lea.hbm %s744_s10, 4  ;;  %s749_s28 = scalar_lea.hbm %s1002_s3, 8 }
  0xf8   : > { %p746_p4 = scmp.ne.s32.totalorder %s744_s10, %s745_s11  ;;  %p750_p9 = scmp.lt.s32.totalorder %s744_s10, %s1002_s3 }
  0xf9   : > { %p751_p10 = scmp.lt.s32.totalorder %s749_s28, %s745_s11 }
  0xfa   : > { %p747_p7 = pnand %p746_p4, %p862_p5 }
  0xfb   : > { %p752_p11 = por %p751_p10, %p750_p9 }
  0xfc   : > { %p748_p8 = pneg %p747_p7 }
  0xfe   : > { %p753_p12 = pnand %p752_p11, %p748_p8 }
 0x100   : > { %756 = shalt.err (!%p753_p12)
}
 0x101   : > { %649 = dma.vmem_to_hbm [thread:$0]  (%p862_p5), %s953_s25, 64, %s955_s26, %s508_s9  }
 0x102 PF: > { %p659_p13 = scmp.ge.s32.totalorder %s795_s15, 2  ;;  %s548_s4 = sand.u32 1, %s783_s12  }
 0x103   : > { %s549_s20 = scalar_lea.sflag [#allocation3], %s548_s4 }
 0x104   : > { %p653_p0 = pnand %p659_p13, %p866_p6 }
 0x106   : > { %p654_p1 = pneg %p653_p0 }
 0x108   : > { %774 = dma.done.wait (%p654_p1), %s549_s20, 64  }
 0x109   : > { %776 = vsyncadd (%p654_p1), %s549_s20, 4294967232  ;;  %s559_s16 = scalar_lea.sflag [#allocation5], %s548_s4 }
 0x10a   : > { %778 = dma.done.wait (%p654_p1), %s559_s16, 64  }
 0x10b   : > { %780 = vsyncadd (%p654_p1), %s559_s16, 4294967232  ;;  %p17_p5 = scmp.ge.s32.totalorder %s849_s18, 4   ;;  %s1005_s12 = smov %s787_s13 }
 0x10c   : > { %s1006_s13 = smov %s791_s14  ;;  %s1007_s14 = smov %s860_s21 }
 0x10d   : > { %s1008_s15 = smov %s849_s18  ;;  %19 = sbr.rel (!%p17_p5) target bundleno = 5 (0x5), region = 80 }
 0x112   :  { %565 = vsyncpa [#allocation3], 1 }
 0x113   :  { %567 = vsyncpa [#allocation3 + $0x1], 1 }
 0x114   :  { %568 = vsyncpa [#allocation5], 1 }
 0x115   :  { %570 = vsyncpa [#allocation5 + $0x1], 1 }

</bundles_post_ra>
